<compile_context>
chip_gen: v6e
topology: v6e:2x2x1
jax: 0.10.0
libtpu: 0.0.40
codegen_flags: <defaults>
</compile_context>

<pallas_src>
import functools

import jax
import jax.numpy as jnp
from jax.experimental import pallas as pl
from jax.experimental.pallas import tpu as pltpu


def _round_up(n, m):
    return ((n + m - 1) // m) * m


def _cdiv(a, b):
    return -(-a // b)


# ---------------------------------------------------------------------------
# Hardware introspection (cheap, cached per-process)
# ---------------------------------------------------------------------------

def _vmem_capacity_bytes():
    try:
        return int(pltpu.get_tpu_info().vmem_capacity_bytes)
    except Exception:
        return 64 << 20              # conservative: v7x per-TensorCore VMEM


def _default_row_tile():
    try:
        kind = jax.devices()[0].device_kind.lower()
    except Exception:
        kind = ""
    # v5e's 4x128^2 MXU and single vst slot favor 128-row tiles; v6e/v7x's
    # 256x256 MXU wants >=256 rows per step.
    if "v5" in kind and ("lite" in kind or "v5e" in kind):
        return 128
    return 256


_BUFFERED1_OK = None


def _probe_kernel(x_ref, o_ref):
    o_ref[...] = x_ref[...]


def _single_buffer_ok():
    """One-time probe that pipeline_mode=pl.Buffered(1) lowers on this backend."""
    global _BUFFERED1_OK
    if _BUFFERED1_OK is None:
        try:
            fn = pl.pallas_call(
                _probe_kernel,
                out_shape=jax.ShapeDtypeStruct((8, 128), jnp.float32),
                grid=(2,),
                in_specs=[pl.BlockSpec((8, 128), lambda i: (0, 0),
                                       pipeline_mode=pl.Buffered(1))],
                out_specs=pl.BlockSpec((8, 128), lambda i: (0, 0)),
            )
            jax.block_until_ready(fn(jnp.zeros((8, 128), jnp.float32)))
            _BUFFERED1_OK = True
        except Exception:
            _BUFFERED1_OK = False
    return _BUFFERED1_OK


# ---------------------------------------------------------------------------
# Dim / padding helpers
# ---------------------------------------------------------------------------

def _ffn_dims(d_hid, d_ff, w_itemsize, tff, vmem_cap):
    """Lane-aligned padded dims and k-tiling of the d_ff reduction axis."""
    d_hid_p = _round_up(d_hid, 128)
    d_ff_128 = _round_up(d_ff, 128)
    if tff is None:
        # Keep W1+W2 fully resident when they fit in ~half the VMEM budget;
        # otherwise pick the largest double-buffered k-slab that fits.
        budget = vmem_cap // 2
        resident = 2 * d_hid_p * d_ff_128 * w_itemsize
        if resident <= budget:
            tff = d_ff_128
        else:
            per_col = 2 * d_hid_p * w_itemsize      # one W1 col + one W2 row
            tff = max(128, (budget // (2 * per_col)) // 128 * 128)
    tff = min(_round_up(tff, 128), d_ff_128)
    nk = _cdiv(d_ff_128, tff)
    tff = _round_up(_cdiv(d_ff_128, nk), 128)
    d_ff_p = nk * tff
    return d_hid_p, d_ff_p, tff, nk


def _pad2(a, rows, cols):
    if a.shape == (rows, cols):
        return a
    return jnp.pad(a, ((0, rows - a.shape[0]), (0, cols - a.shape[1])))


def _pad_row(v, cols):
    v = v.reshape(1, -1)
    if v.shape[1] == cols:
        return v
    return jnp.pad(v, ((0, 0), (0, cols - v.shape[1])))


def pad_ffn_params(w1, b1, w2, b2, gamma, beta, *, tff=None):
    """Zero-pad weights / biases / LN params to lane-aligned shapes once.

    Call outside the hot path and cache the result: the wrapper skips its
    jnp.pad copies whenever shapes already match, removing per-call HBM
    read+write traffic for the (large) weight tensors.
    """
    d_hid, d_ff = w1.shape
    w_item = jnp.dtype(w1.dtype).itemsize
    vmem_cap = (_vmem_capacity_bytes() * 3) // 4
    d_hid_p, d_ff_p, _, _ = _ffn_dims(d_hid, d_ff, w_item, tff, vmem_cap)
    return (_pad2(w1, d_hid_p, d_ff_p), _pad_row(b1, d_ff_p),
            _pad2(w2, d_ff_p, d_hid_p), _pad_row(b2, d_hid_p),
            _pad_row(gamma, d_hid_p), _pad_row(beta, d_hid_p))


# ---------------------------------------------------------------------------
# Kernel
# ---------------------------------------------------------------------------

def _ffn_kernel(x_ref, w1_ref, b1_ref, w2_ref, b2_ref, gamma_ref, beta_ref,
                o_ref, acc_ref, *, eps, d_valid, approx_reciprocal):
    k = pl.program_id(1)

    @pl.when(k == 0)
    def _init():
        acc_ref[...] = jnp.zeros_like(acc_ref)

    # ---- matmuls in the native (possibly bf16) dtype, f32 MXU accumulation.
    x = x_ref[...]                                            # (tm, d_hid_p)
    h = jnp.dot(x, w1_ref[...], preferred_element_type=jnp.float32)
    h = h + b1_ref[...].astype(jnp.float32)                   # (tm, tff)
    h = jnp.maximum(h, 0.0)                                   # ReLU
    # TODO(synk): FeatureDropout(relu_dropout / residual_dropout) are identity
    # in eval mode; training-mode per-batch-element feature masks not implemented.
    h = h.astype(w2_ref.dtype)                                # bf16 MXU path
    acc_ref[...] += jnp.dot(h, w2_ref[...], preferred_element_type=jnp.float32)

    # ---- f32 epilogue on the last d_ff slab: residual + LayerNorm ----------
    @pl.when(k == pl.num_programs(1) - 1)
    def _epilogue():
        y = acc_ref[...] + b2_ref[...].astype(jnp.float32)    # (tm, d_hid_p)
        z = y + x.astype(jnp.float32)                         # residual
        d_pad = z.shape[-1]
        # Padded columns of z are exactly zero (zero-padded x / W2 cols / b2),
        # so the plain row sum already equals the sum over the valid columns.
        mu = jnp.sum(z, axis=-1, keepdims=True) * (1.0 / d_valid)
        if d_valid < d_pad:            # mask only when d_hid not 128-aligned
            col = jax.lax.broadcasted_iota(jnp.int32, z.shape, 1)
            diff = jnp.where(col < d_valid, z - mu, 0.0)
        else:
            diff = z - mu
        var_unbiased = jnp.sum(diff * diff, axis=-1, keepdims=True) * (
            1.0 / (d_valid - 1))
        sigma = jnp.sqrt(var_unbiased)     # torch.std: unbiased
        denom = sigma + eps                # eps added to the std
        if approx_reciprocal:
            ln = diff * pl.reciprocal(denom, approx=True)      # EUP slot
        else:
            ln = diff / denom                                   # exact module math
        out = (ln * gamma_ref[...].astype(jnp.float32)
               + beta_ref[...].astype(jnp.float32))
        o_ref[...] = out.astype(o_ref.dtype)


# ---------------------------------------------------------------------------
# Wrapper
# ---------------------------------------------------------------------------

def positionwise_feed_forward(x, w1, b1, w2, b2, gamma, beta, *,
                              eps=1e-3, tm=None, tff=None,
                              approx_reciprocal=True):
    """Fused LayerNorm(W2 @ relu(W1 @ x + b1) + b2 + x) (eval-mode module).

    x:  (T, d_hid);  w1: (d_hid, d_ff) [= torch w_1.weight.T];  w2: (d_ff, d_hid).
    Weights / biases / LN params may be pre-padded with pad_ffn_params()
    (padded entries must be zero) to skip per-call jnp.pad copies.
    tm=None / tff=None auto-select per-chip row tile and d_ff slab size.
    """
    T, d_hid = x.shape
    assert d_hid >= 2        # LayerNormalization's d_hid==1 passthrough not needed
    d_ff = w1.shape[1]
    assert w1.shape[0] in (d_hid, _round_up(d_hid, 128))
    assert w2.shape == (w1.shape[1], w1.shape[0])

    x_item = jnp.dtype(x.dtype).itemsize
    w_item = jnp.dtype(w1.dtype).itemsize

    # Leave headroom below physical VMEM for Mosaic internal scratch / spills
    # (≈48 MiB cap on v7x's 64 MiB per-core VMEM, 96 MiB on v5e/v6e).
    vmem_cap = (_vmem_capacity_bytes() * 3) // 4

    d_hid_p, d_ff_p, tff_eff, nk = _ffn_dims(d_hid, d_ff, w_item, tff, vmem_cap)

    # ---- row tile: per-chip default, MXU-aligned, >=2 tiles when worthwhile.
    tm = _default_row_tile() if tm is None else tm
    if T >= 128:
        tm_eff = min(_round_up(tm, 128), _round_up(T, 128))
    else:
        tm_eff = _round_up(T, 16)
    T_p = _round_up(T, tm_eff)
    if T_p // tm_eff < 2 and T >= 256:
        # Two row tiles so ("parallel", ...) can shard across v7x's 2 TCs.
        tm_eff = _round_up(_cdiv(T, 2), 128)
        T_p = _round_up(T, tm_eff)
    n_rows = T_p // tm_eff

    # ---- zero-pad (skipped entirely when shapes already aligned/pre-padded).
    x_p = _pad2(x, T_p, d_hid_p)
    w1_p = _pad2(w1, d_hid_p, d_ff_p)
    w2_p = _pad2(w2, d_ff_p, d_hid_p)
    b1_p = _pad_row(b1, d_ff_p)
    b2_p = _pad_row(b2, d_hid_p)
    gamma_p = _pad_row(gamma, d_hid_p)
    beta_p = _pad_row(beta, d_hid_p)

    # ---- buffering: constant-index blocks single-buffered (never re-DMA'd).
    single_ok = _single_buffer_ok()
    const_mode = pl.Buffered(1) if single_ok else None
    # W1 / b1 / W2 vary along k when nk > 1 -> keep default double buffering.
    w_mode = const_mode if nk == 1 else None

    def _spec(shape, index_map, mode=None):
        if mode is None:
            return pl.BlockSpec(shape, index_map)
        return pl.BlockSpec(shape, index_map, pipeline_mode=mode)

    wbufs = 1 if (nk == 1 and single_ok) else 2
    weight_tile_bytes = 2 * d_hid_p * tff_eff * w_item
    needed = (wbufs * (weight_tile_bytes + 8 * tff_eff * w_item)   # W1, W2, b1
              + 2 * 2 * tm_eff * d_hid_p * x_item                  # x + out tiles
              + tm_eff * d_hid_p * 4                               # f32 accumulator
              + 8 * 3 * d_hid_p * 4                                # b2 / a_2 / b_2
              + tm_eff * tff_eff * (4 + w_item)                    # h (f32 + cast)
              + 4 * tm_eff * d_hid_p * 4)                          # epilogue temps
    vmem_limit = int(min(max(needed * 3 // 2, 4 << 20), vmem_cap))

    cost = pl.CostEstimate(
        flops=4 * T_p * d_hid_p * d_ff_p + 12 * T_p * d_hid_p,
        transcendentals=2 * T_p,
        bytes_accessed=(2 * T_p * d_hid_p * x_item
                        + (2 * d_hid_p * d_ff_p + d_ff_p) * w_item
                        + 3 * d_hid_p * 4),
    )

    kernel = functools.partial(_ffn_kernel, eps=eps, d_valid=d_hid,
                               approx_reciprocal=approx_reciprocal)

    # TODO(synk): for multi-layer stacks, prefetch the next layer's W1/W2 with
    # a cross-pallas_call DMA future (P10) to hide the first-step weight fill.
    # TODO(synk): fp8 weight path on v7x (halves resident-weight VMEM) not done.
    out_p = pl.pallas_call(
        kernel,
        out_shape=jax.ShapeDtypeStruct((T_p, d_hid_p), x.dtype),
        grid_spec=pltpu.PrefetchScalarGridSpec(
            num_scalar_prefetch=0,
            grid=(n_rows, nk),
            in_specs=[
                _spec((tm_eff, d_hid_p), lambda i, k: (i, 0)),              # x rows
                _spec((d_hid_p, tff_eff), lambda i, k: (0, k), w_mode),     # W1 slab
                _spec((1, tff_eff), lambda i, k: (0, k), w_mode),           # b1 slab
                _spec((tff_eff, d_hid_p), lambda i, k: (k, 0), w_mode),     # W2 slab
                _spec((1, d_hid_p), lambda i, k: (0, 0), const_mode),       # b2
                _spec((1, d_hid_p), lambda i, k: (0, 0), const_mode),       # a_2
                _spec((1, d_hid_p), lambda i, k: (0, 0), const_mode),       # b_2 (LN)
            ],
            out_specs=pl.BlockSpec((tm_eff, d_hid_p), lambda i, k: (i, 0)),
            scratch_shapes=[pltpu.VMEM((tm_eff, d_hid_p), jnp.float32)],
        ),
        compiler_params=pltpu.CompilerParams(
            dimension_semantics=("parallel", "arbitrary"),
            vmem_limit_bytes=vmem_limit),
        cost_estimate=cost,
    )(x_p, w1_p, b1_p, w2_p, b2_p, gamma_p, beta_p)

    if T_p == T and d_hid_p == d_hid:
        return out_p
    return out_p[:T, :d_hid]


# ---------------------------------------------------------------------------
# Reference & self-test
# ---------------------------------------------------------------------------

def _reference(x, w1, b1, w2, b2, gamma, beta, eps=1e-3):
    xf = x.astype(jnp.float32)
    h = jnp.maximum(xf @ w1.astype(jnp.float32) + b1.astype(jnp.float32), 0.0)
    y = h @ w2.astype(jnp.float32) + b2.astype(jnp.float32)
    z = y + xf
    d = z.shape[-1]
    mu = jnp.mean(z, axis=-1, keepdims=True)
    sigma = jnp.sqrt(jnp.sum((z - mu) ** 2, axis=-1, keepdims=True) / (d - 1))
    ln = (z - mu) / (sigma + eps)
    return ln * gamma.astype(jnp.float32) + beta.astype(jnp.float32)


if __name__ == "__main__":
    key = jax.random.PRNGKey(0)

    # ---- Case A/B/C: small, unaligned shapes (masked LN, nk == 1) ----------
    T, d_hid, d_ff = 12, 32, 64
    kx, k1, k2, kb1, kb2 = jax.random.split(key, 5)
    x = jax.random.normal(kx, (T, d_hid), dtype=jnp.float32)
    w1 = (jax.random.normal(k1, (d_hid, d_ff), dtype=jnp.float32)
          * (1.0 / jnp.sqrt(d_hid)))
    b1 = jax.random.normal(kb1, (d_ff,), dtype=jnp.float32) * 0.01
    w2 = (jax.random.normal(k2, (d_ff, d_hid), dtype=jnp.float32)
          * (1.0 / jnp.sqrt(d_ff)))
    b2 = jax.random.normal(kb2, (d_hid,), dtype=jnp.float32) * 0.01
    gamma = jnp.ones((d_hid,), dtype=jnp.float32)
    beta = jnp.zeros((d_hid,), dtype=jnp.float32)
    ref = _reference(x, w1, b1, w2, b2, gamma, beta)

    out_exact = jax.block_until_ready(
        positionwise_feed_forward(x, w1, b1, w2, b2, gamma, beta,
                                  approx_reciprocal=False))
    assert out_exact.shape == (T, d_hid)
    assert jnp.allclose(out_exact, ref, atol=2e-4, rtol=2e-4), \
        "mismatch vs reference (exact path)"

    out_fast = jax.block_until_ready(
        positionwise_feed_forward(x, w1, b1, w2, b2, gamma, beta))
    assert jnp.allclose(out_fast, ref, atol=2e-2, rtol=2e-2), \
        "mismatch vs reference (approx-reciprocal path)"

    bf = jnp.bfloat16
    out_bf16 = jax.block_until_ready(
        positionwise_feed_forward(x.astype(bf), w1.astype(bf), b1.astype(bf),
                                  w2.astype(bf), b2.astype(bf), gamma, beta))
    assert out_bf16.dtype == bf
    assert jnp.allclose(out_bf16.astype(jnp.float32), ref,
                        atol=0.25, rtol=0.05), \
        "mismatch vs reference (bf16 path)"

    # ---- Case D: aligned shapes, pre-padded params, forced k-tiling (nk=2) -
    T2, dh2, dff2 = 320, 256, 1024
    ka, kb, kc, kd, ke, kf, kg = jax.random.split(jax.random.PRNGKey(1), 7)
    x2 = jax.random.normal(ka, (T2, dh2), dtype=jnp.float32)
    w1_2 = jax.random.normal(kb, (dh2, dff2), dtype=jnp.float32) / jnp.sqrt(dh2)
    b1_2 = jax.random.normal(kc, (dff2,), dtype=jnp.float32) * 0.01
    w2_2 = jax.random.normal(kd, (dff2, dh2), dtype=jnp.float32) / jnp.sqrt(dff2)
    b2_2 = jax.random.normal(ke, (dh2,), dtype=jnp.float32) * 0.01
    gamma2 = 1.0 + 0.1 * jax.random.normal(kf, (dh2,), dtype=jnp.float32)
    beta2 = 0.05 * jax.random.normal(kg, (dh2,), dtype=jnp.float32)

    padded = pad_ffn_params(w1_2, b1_2, w2_2, b2_2, gamma2, beta2)  # cacheable
    out2 = jax.block_until_ready(
        positionwise_feed_forward(x2, *padded, tm=128, tff=512,
                                  approx_reciprocal=False))
    ref2 = _reference(x2, w1_2, b1_2, w2_2, b2_2, gamma2, beta2)
    assert out2.shape == (T2, dh2)
    assert jnp.allclose(out2, ref2, atol=2e-2, rtol=2e-2), \
        "mismatch vs reference (k-tiled / multi-row-tile path)"

    print("KERNEL_OK")
</pallas_src>

<mosaic_0001>
module attributes {stable_mosaic.version = 11 : i64} {
  func.func @_probe_kernel(%arg0: i32, %arg1: memref<8x128xf32, #tpu.memory_space<vmem>>, %arg2: memref<8x128xf32, #tpu.memory_space<vmem>>) attributes {dimension_semantics = [#tpu.dimension_semantics<arbitrary>], iteration_bounds = array<i64: 2>, scalar_prefetch = 0 : i64, scratch_operands = 0 : i64, tpu.core_type = #tpu.core_type<tc>, window_params = [{pipeline_mode = #tpu.pipeline_mode<synchronous>, transform_indices = @transform_0, window_bounds = array<i64: 8, 128>}, {pipeline_mode = #tpu.pipeline_mode<synchronous>, transform_indices = @transform_1, window_bounds = array<i64: 8, 128>}]} {
    %c0 = arith.constant 0 : index
    %c0_0 = arith.constant 0 : index
    %0 = vector.load %arg1[%c0, %c0_0] : memref<8x128xf32, #tpu.memory_space<vmem>>, vector<8x128xf32>
    %c0_1 = arith.constant 0 : index
    %c0_2 = arith.constant 0 : index
    %1 = vector.load %arg2[%c0_1, %c0_2] : memref<8x128xf32, #tpu.memory_space<vmem>>, vector<8x128xf32>
    tpu.vector_store %arg2[%c0_1, %c0_2], %0 {strides = array<i32>} : memref<8x128xf32, #tpu.memory_space<vmem>>, vector<8x128xf32>,
    return
  }
  func.func @transform_0(%arg0: i32) -> (i32, i32) {
    %c0_i32 = arith.constant 0 : i32
    %c0_i32_0 = arith.constant 0 : i32
    %c0_i32_1 = arith.constant 0 : i32
    return %c0_i32, %c0_i32_0 : i32, i32
  }
  func.func @transform_1(%arg0: i32) -> (i32, i32) {
    %c0_i32 = arith.constant 0 : i32
    %c0_i32_0 = arith.constant 0 : i32
    %c0_i32_1 = arith.constant 0 : i32
    return %c0_i32, %c0_i32_0 : i32, i32
  }
}

module attributes {stable_mosaic.version = 11 : i64} {
  func.func @_ffn_kernel(%arg0: i32, %arg1: i32, %arg2: memref<16x128xf32, #tpu.memory_space<vmem>>, %arg3: memref<128x128xf32, #tpu.memory_space<vmem>>, %arg4: memref<1x128xf32, #tpu.memory_space<vmem>>, %arg5: memref<128x128xf32, #tpu.memory_space<vmem>>, %arg6: memref<1x128xf32, #tpu.memory_space<vmem>>, %arg7: memref<1x128xf32, #tpu.memory_space<vmem>>, %arg8: memref<1x128xf32, #tpu.memory_space<vmem>>, %arg9: memref<16x128xf32, #tpu.memory_space<vmem>>, %arg10: memref<16x128xf32, #tpu.memory_space<vmem>>) attributes {dimension_semantics = [#tpu.dimension_semantics<parallel>, #tpu.dimension_semantics<arbitrary>], iteration_bounds = array<i64: 1, 1>, scalar_prefetch = 0 : i64, scratch_operands = 1 : i64, tpu.core_type = #tpu.core_type<tc>, window_params = [{transform_indices = @transform_0, window_bounds = array<i64: 16, 128>}, {transform_indices = @transform_1, window_bounds = array<i64: 128, 128>}, {transform_indices = @transform_2, window_bounds = array<i64: 1, 128>}, {transform_indices = @transform_3, window_bounds = array<i64: 128, 128>}, {pipeline_mode = #tpu.pipeline_mode<synchronous>, transform_indices = @transform_4, window_bounds = array<i64: 1, 128>}, {pipeline_mode = #tpu.pipeline_mode<synchronous>, transform_indices = @transform_5, window_bounds = array<i64: 1, 128>}, {pipeline_mode = #tpu.pipeline_mode<synchronous>, transform_indices = @transform_6, window_bounds = array<i64: 1, 128>}, {transform_indices = @transform_7, window_bounds = array<i64: 16, 128>}]} {
    %c0_i32 = arith.constant 0 : i32
    %0 = arith.cmpi eq, %arg1, %c0_i32 : i32
    %1 = arith.extui %0 : i1 to i32
    %c0_i32_0 = arith.constant 0 : i32
    %2 = arith.cmpi ne, %1, %c0_i32_0 : i32
    scf.if %2 {
      %cst_16 = arith.constant 0.000000e+00 : f32
      %19 = vector.broadcast %cst_16 : f32 to vector<16x128xf32>
      %c0_17 = arith.constant 0 : index
      %c0_18 = arith.constant 0 : index
      %20 = vector.load %arg10[%c0_17, %c0_18] : memref<16x128xf32, #tpu.memory_space<vmem>>, vector<16x128xf32>
      tpu.vector_store %arg10[%c0_17, %c0_18], %19 {strides = array<i32>} : memref<16x128xf32, #tpu.memory_space<vmem>>, vector<16x128xf32>,
    } else {
    }
    %c0 = arith.constant 0 : index
    %c0_1 = arith.constant 0 : index
    %3 = vector.load %arg2[%c0, %c0_1] : memref<16x128xf32, #tpu.memory_space<vmem>>, vector<16x128xf32>
    %c0_2 = arith.constant 0 : index
    %c0_3 = arith.constant 0 : index
    %4 = vector.load %arg3[%c0_2, %c0_3] : memref<128x128xf32, #tpu.memory_space<vmem>>, vector<128x128xf32>
    %cst = arith.constant dense<0.000000e+00> : vector<16x128xf32>
    %5 = tpu.matmul %3, %4, %cst {dimension_numbers = #tpu.dot_dimension_numbers<[1], [0], [0], [1], [0, 0, 1, 1], [], []>} : vector<16x128xf32>, vector<128x128xf32>, vector<16x128xf32> -> vector<16x128xf32>
    %c0_4 = arith.constant 0 : index
    %c0_5 = arith.constant 0 : index
    %6 = vector.load %arg4[%c0_4, %c0_5] : memref<1x128xf32, #tpu.memory_space<vmem>>, vector<1x128xf32>
    %7 = vector.broadcast %6 : vector<1x128xf32> to vector<16x128xf32>
    %8 = arith.addf %5, %7 : vector<16x128xf32>
    %cst_6 = arith.constant 0.000000e+00 : f32
    %9 = vector.broadcast %cst_6 : f32 to vector<16x128xf32>
    %10 = arith.maximumf %8, %9 : vector<16x128xf32>
    %c0_7 = arith.constant 0 : index
    %c0_8 = arith.constant 0 : index
    %11 = vector.load %arg10[%c0_7, %c0_8] : memref<16x128xf32, #tpu.memory_space<vmem>>, vector<16x128xf32>
    %c0_9 = arith.constant 0 : index
    %c0_10 = arith.constant 0 : index
    %12 = vector.load %arg5[%c0_9, %c0_10] : memref<128x128xf32, #tpu.memory_space<vmem>>, vector<128x128xf32>
    %cst_11 = arith.constant dense<0.000000e+00> : vector<16x128xf32>
    %13 = tpu.matmul %10, %12, %cst_11 {dimension_numbers = #tpu.dot_dimension_numbers<[1], [0], [0], [1], [0, 0, 1, 1], [], []>} : vector<16x128xf32>, vector<128x128xf32>, vector<16x128xf32> -> vector<16x128xf32>
    %14 = arith.addf %11, %13 : vector<16x128xf32>
    %c0_12 = arith.constant 0 : index
    %c0_13 = arith.constant 0 : index
    %15 = vector.load %arg10[%c0_12, %c0_13] : memref<16x128xf32, #tpu.memory_space<vmem>>, vector<16x128xf32>
    tpu.vector_store %arg10[%c0_12, %c0_13], %14 {strides = array<i32>} : memref<16x128xf32, #tpu.memory_space<vmem>>, vector<16x128xf32>,
    %c0_i32_14 = arith.constant 0 : i32
    %16 = arith.cmpi eq, %arg1, %c0_i32_14 : i32
    %17 = arith.extui %16 : i1 to i32
    %c0_i32_15 = arith.constant 0 : i32
    %18 = arith.cmpi ne, %17, %c0_i32_15 : i32
    scf.if %18 {
      %c0_16 = arith.constant 0 : index
      %c0_17 = arith.constant 0 : index
      %19 = vector.load %arg10[%c0_16, %c0_17] : memref<16x128xf32, #tpu.memory_space<vmem>>, vector<16x128xf32>
      %c0_18 = arith.constant 0 : index
      %c0_19 = arith.constant 0 : index
      %20 = vector.load %arg6[%c0_18, %c0_19] : memref<1x128xf32, #tpu.memory_space<vmem>>, vector<1x128xf32>
      %21 = vector.broadcast %20 : vector<1x128xf32> to vector<16x128xf32>
      %22 = arith.addf %19, %21 : vector<16x128xf32>
      %23 = arith.addf %22, %3 : vector<16x128xf32>
      %cst_20 = arith.constant dense<0.000000e+00> : vector<16xf32>
      %24 = vector.multi_reduction <add>, %23, %cst_20 [1] : vector<16x128xf32> to vector<16xf32>
      %25 = vector.shape_cast %24 : vector<16xf32> to vector<16x1xf32>
      %cst_21 = arith.constant 3.125000e-02 : f32
      %26 = vector.broadcast %cst_21 : f32 to vector<16x1xf32>
      %27 = arith.mulf %25, %26 : vector<16x1xf32>
      %28 = tpu.iota {dimensions = array<i32: 1>} : vector<16x128xi32>
      %c32_i32 = arith.constant 32 : i32
      %29 = vector.broadcast %c32_i32 : i32 to vector<16x128xi32>
      %30 = arith.cmpi slt, %28, %29 : vector<16x128xi32>
      %31 = vector.broadcast %27 : vector<16x1xf32> to vector<16x128xf32>
      %32 = arith.subf %23, %31 : vector<16x128xf32>
      %cst_22 = arith.constant 0.000000e+00 : f32
      %33 = vector.broadcast %cst_22 : f32 to vector<16x128xf32>
      %34 = arith.select %30, %32, %33 : vector<16x128xi1>, vector<16x128xf32>
      %35 = arith.mulf %34, %34 : vector<16x128xf32>
      %cst_23 = arith.constant dense<0.000000e+00> : vector<16xf32>
      %36 = vector.multi_reduction <add>, %35, %cst_23 [1] : vector<16x128xf32> to vector<16xf32>
      %37 = vector.shape_cast %36 : vector<16xf32> to vector<16x1xf32>
      %cst_24 = arith.constant 0.0322580636 : f32
      %38 = vector.broadcast %cst_24 : f32 to vector<16x1xf32>
      %39 = arith.mulf %37, %38 : vector<16x1xf32>
      %40 = math.sqrt %39 : vector<16x1xf32>
      %cst_25 = arith.constant 1.000000e-03 : f32
      %41 = vector.broadcast %cst_25 : f32 to vector<16x1xf32>
      %42 = arith.addf %40, %41 : vector<16x1xf32>
      %43 = vector.broadcast %42 : vector<16x1xf32> to vector<16x128xf32>
      %44 = arith.divf %34, %43 : vector<16x128xf32>
      %c0_26 = arith.constant 0 : index
      %c0_27 = arith.constant 0 : index
      %45 = vector.load %arg7[%c0_26, %c0_27] : memref<1x128xf32, #tpu.memory_space<vmem>>, vector<1x128xf32>
      %46 = vector.broadcast %45 : vector<1x128xf32> to vector<16x128xf32>
      %47 = arith.mulf %44, %46 : vector<16x128xf32>
      %c0_28 = arith.constant 0 : index
      %c0_29 = arith.constant 0 : index
      %48 = vector.load %arg8[%c0_28, %c0_29] : memref<1x128xf32, #tpu.memory_space<vmem>>, vector<1x128xf32>
      %49 = vector.broadcast %48 : vector<1x128xf32> to vector<16x128xf32>
      %50 = arith.addf %47, %49 : vector<16x128xf32>
      %c0_30 = arith.constant 0 : index
      %c0_31 = arith.constant 0 : index
      %51 = vector.load %arg9[%c0_30, %c0_31] : memref<16x128xf32, #tpu.memory_space<vmem>>, vector<16x128xf32>
      tpu.vector_store %arg9[%c0_30, %c0_31], %50 {strides = array<i32>} : memref<16x128xf32, #tpu.memory_space<vmem>>, vector<16x128xf32>,
    } else {
    }
    return
  }
  func.func @transform_0(%arg0: i32, %arg1: i32) -> (i32, i32) {
    %c0_i32 = arith.constant 0 : i32
    %c0_i32_0 = arith.constant 0 : i32
    return %arg0, %c0_i32 : i32, i32
  }
  func.func @transform_1(%arg0: i32, %arg1: i32) -> (i32, i32) {
    %c0_i32 = arith.constant 0 : i32
    %c0_i32_0 = arith.constant 0 : i32
    return %c0_i32, %arg1 : i32, i32
  }
  func.func @transform_2(%arg0: i32, %arg1: i32) -> (i32, i32) {
    %c0_i32 = arith.constant 0 : i32
    %c0_i32_0 = arith.constant 0 : i32
    return %c0_i32, %arg1 : i32, i32
  }
  func.func @transform_3(%arg0: i32, %arg1: i32) -> (i32, i32) {
    %c0_i32 = arith.constant 0 : i32
    %c0_i32_0 = arith.constant 0 : i32
    return %arg1, %c0_i32 : i32, i32
  }
  func.func @transform_4(%arg0: i32, %arg1: i32) -> (i32, i32) {
    %c0_i32 = arith.constant 0 : i32
    %c0_i32_0 = arith.constant 0 : i32
    %c0_i32_1 = arith.constant 0 : i32
    return %c0_i32, %c0_i32_0 : i32, i32
  }
  func.func @transform_5(%arg0: i32, %arg1: i32) -> (i32, i32) {
    %c0_i32 = arith.constant 0 : i32
    %c0_i32_0 = arith.constant 0 : i32
    %c0_i32_1 = arith.constant 0 : i32
    return %c0_i32, %c0_i32_0 : i32, i32
  }
  func.func @transform_6(%arg0: i32, %arg1: i32) -> (i32, i32) {
    %c0_i32 = arith.constant 0 : i32
    %c0_i32_0 = arith.constant 0 : i32
    %c0_i32_1 = arith.constant 0 : i32
    return %c0_i32, %c0_i32_0 : i32, i32
  }
  func.func @transform_7(%arg0: i32, %arg1: i32) -> (i32, i32) {
    %c0_i32 = arith.constant 0 : i32
    %c0_i32_0 = arith.constant 0 : i32
    return %arg0, %c0_i32 : i32, i32
  }
}

</mosaic_0001>

<bundles_post_ra>
// kernel: tpu_custom_call.1
= control target key start
LH: loop header
LB: loop body
LE: loop exit
PB: predicated region body
PF: predicated region fallthrough
CT: control target
= control target key end

     0   :  { %6 = vsyncpa [#allocation3], 0  ;;  %s304_s0 = inlined_call_operand.hbm [shape: f32[8,128], index: 0, kind: input, shape index: {}]   ;;  %s305_s1 = inlined_call_operand.hbm [shape: f32[8,128], index: 1, kind: output, shape index: {}]  }
   0x1   :  { %7 = vsyncpa [#allocation4], 0  ;;  %s257_s6 = smov 0  }
   0x2 LB: > { %s144_s7 = sadd.s32 4294967295, %s243_s6   ;;  %p145_p0 = scmp.ge.s32.totalorder %s243_s6, 1  ;;  %s243_s6 = sphi %s257_s6, %s13_s6  }
   0x3   : > { %p60_p1 = scmp.lt.s32.totalorder %s243_s6, 3  ;;  %p269_p3 = scmp.eq.s32.totalorder %s144_s7, 0 }
   0x4   : > { %s245_s10 = smov [#allocation2]  }
   0x5   : > { %p265_p2 = pnand %p145_p0, %p60_p1  ;;  %s73_s11 = sshll.u32 %s245_s10, 4  ;;  %s74_s11 = int_to_ptr.vmem [resolvable:$true] %s73_s11 }
   0x6   : > { %s190_s12 = scalar_lea.vmem %s74_s11, 128  ;;  %p198_p10 = scmp.lt.s32.totalorder %s74_s11, %s74_s11 }
   0x7   : > { %p161_p4 = pneg %p265_p2  ;;  %p191_p7 = scmp.ne.s32.totalorder %s74_s11, %s190_s12 }
   0x8   : > { %p199_p11 = scmp.lt.s32.totalorder %s190_s12, %s190_s12 }
   0x9   : > { %p162_p5 = pnand %p269_p3, %p161_p4 }
   0xa   : > { %p200_p12 = por %p199_p11, %p198_p10 }
   0xb   : > { %p181_p6 = pneg %p162_p5 }
   0xd   : > { %p193_p8 = pnand %p191_p7, %p181_p6 }
   0xf   : > { %p194_p9 = pneg %p193_p8 }
  0x11   : > { %p201_p13 = pnand %p200_p12, %p194_p9 }
  0x13   : > { %204 = shalt.err (!%p201_p13)
}
  0x14   : > { %164 = dma.hbm_to_vmem [thread:$0]  (!%p162_p5), %s304_s0, 128, %s74_s11, [#allocation3]  }
  0x15   : > { %86 = sbr.rel (%p265_p2) target bundleno = 42 (0x2a), region = 24 }
  0x1a   : > { %234 = dma.done.wait (%p269_p3), [#allocation3], 128  }
  0x1b   : > { %236 = vsyncadd (%p269_p3), [#allocation3], 4294967168  ;;  %s246_s15 = smov [#allocation5]   ;;  %p286_p0 = scmp.eq.s32.totalorder %s144_s7, 1  ;;  %v96_v0 = vld [vmem:[#allocation2] sm:$0xff] }
  0x1c   : > { %s105_s16 = sshll.u32 %s246_s15, 4  ;;  %97 = vst [vmem:[#allocation5] sm:$0xff] %v96_v0  ;;  %s106_s16 = int_to_ptr.vmem [resolvable:$true] %s105_s16 }
  0x1d   : > { %s205_s18 = scalar_lea.vmem %s106_s16, 128  ;;  %p212_p5 = scmp.lt.s32.totalorder %s106_s16, %s106_s16 }
  0x1e   : > { %p206_p1 = scmp.ne.s32.totalorder %s106_s16, %s205_s18  ;;  %p213_p6 = scmp.lt.s32.totalorder %s205_s18, %s205_s18 }
  0x20   : > { %p207_p2 = pnand %p206_p1, %p286_p0  ;;  %p214_p7 = por %p213_p6, %p212_p5 }
  0x22   : > { %p208_p4 = pneg %p207_p2 }
  0x24   : > { %p215_p8 = pnand %p214_p7, %p208_p4 }
  0x26   : > { %218 = shalt.err (!%p215_p8)
}
  0x27   : > { %158 = dma.vmem_to_hbm [thread:$0]  (%p286_p0), %s106_s16, 128, %s305_s1, [#allocation4]  }
  0x28   : > { %238 = dma.done.wait (%p286_p0), [#allocation4], 128  }
  0x29   : > { %240 = vsyncadd (%p286_p0), [#allocation4], 4294967168 }
  0x2a PF: > { %s13_s6 = sadd.s32 1, %s243_s6  }
  0x2b   : > { %p10_p3 = scmp.ge.s32.totalorder %s13_s6, 4  }
  0x2d   :  { %12 = sbr.rel (!%p10_p3) target bundleno = 2 (0x2), region = 53 }
  0x32   :  { %118 = vsyncpa [#allocation3], 1 }
  0x33   :  { %120 = vsyncpa [#allocation3 + $0x1], 1 }
  0x34   :  { %121 = vsyncpa [#allocation4], 1 }
  0x35   :  { %123 = vsyncpa [#allocation4 + $0x1], 1 }

// kernel: tpu_custom_call.1
= control target key start
LH: loop header
LB: loop body
LE: loop exit
PB: predicated region body
PF: predicated region fallthrough
CT: control target
= control target key end

     0   :  { %12 = vsyncpa [#allocation4], 0  ;;  %s664_s0 = inlined_call_operand.hbm [shape: f32[16,128], index: 0, kind: input, shape index: {}]   ;;  %s665_s1 = inlined_call_operand.hbm [shape: f32[128,128], index: 1, kind: input, shape index: {}]   ;;  %s666_s2 = inlined_call_operand.vmem [shape: f32[1,128], index: 2, kind: input, shape index: {}]   ;;  %s667_s3 = inlined_call_operand.hbm [shape: f32[128,128], index: 3, kind: input, shape index: {}]   ;;  %s668_s4 = inlined_call_operand.vmem [shape: f32[1,128], index: 4, kind: input, shape index: {}]   ;;  %s669_s5 = inlined_call_operand.vmem [shape: f32[1,128], index: 5, kind: input, shape index: {}]   ;;  %s670_s6 = inlined_call_operand.vmem [shape: f32[1,128], index: 6, kind: input, shape index: {}]   ;;  %s671_s7 = inlined_call_operand.hbm [shape: f32[16,128], index: 7, kind: output, shape index: {}]  }
   0x1   :  { %13 = vsyncpa [#allocation7], 0 }
   0x2   :  { %14 = vsyncpa [#allocation5], 0  ;;  %s578_s24 = smov [#allocation6]   ;;  %s579_s26 = smov [#allocation3]  }
   0x3   :  { %s32_s25 = sshll.u32 %s578_s24, 4  ;;  %s20_s27 = sshll.u32 %s579_s26, 4  ;;  %s33_s25 = int_to_ptr.vmem [resolvable:$true] %s32_s25  ;;  %s21_s27 = int_to_ptr.vmem [resolvable:$true] %s20_s27 }
   0x4   :  { %s500_s28 = scalar_lea.vmem %s33_s25, 2048  ;;  %p505_p1 = scmp.lt.s32.totalorder %s33_s25, %s33_s25 }
   0x5   :  { %p501_p0 = scmp.ne.s32.totalorder %s33_s25, %s500_s28  ;;  %p506_p2 = scmp.lt.s32.totalorder %s500_s28, %s500_s28 }
   0x7   :  { %p507_p3 = por %p506_p2, %p505_p1 }
   0x9   :  { %p508_p4 = pnand %p507_p3, %p501_p0 }
   0xb   :  { %511 = shalt.err (!%p508_p4)
}
   0xc   :  { %s580_s29 = smov 128   ;;  %s581_s30 = smov 8  }
   0xd   :  { %38 = dma.hbm_to_vmem [thread:$0]  %s665_s1, 2048, %s33_s25, [#allocation7], %s580_s29, %s580_s29, %s581_s30  }
   0xe   :  { %s520_s10 = scalar_lea.vmem %s21_s27, 256  ;;  %p525_p6 = scmp.lt.s32.totalorder %s21_s27, %s21_s27 }
   0xf   :  { %p521_p5 = scmp.ne.s32.totalorder %s21_s27, %s520_s10  ;;  %p526_p7 = scmp.lt.s32.totalorder %s520_s10, %s520_s10 }
  0x11   :  { %p527_p8 = por %p526_p7, %p525_p6 }
  0x13   :  { %p528_p9 = pnand %p527_p8, %p521_p5 }
  0x15   :  { %531 = shalt.err (!%p528_p9)
}
  0x16   :  { %26 = dma.hbm_to_vmem [thread:$0]  %s664_s0, 256, %s21_s27, [#allocation4], %s580_s29, %s580_s29, %s581_s30  }
  0x17   :  { %s582_s13 = smov [#allocation8]  }
  0x18   :  { %s46_s14 = sshll.u32 %s582_s13, 4  ;;  %s47_s14 = int_to_ptr.vmem [resolvable:$true] %s46_s14 }
  0x19   :  { %s540_s15 = scalar_lea.vmem %s47_s14, 2048  ;;  %p545_p11 = scmp.lt.s32.totalorder %s47_s14, %s47_s14 }
  0x1a   :  { %p541_p10 = scmp.ne.s32.totalorder %s47_s14, %s540_s15  ;;  %p546_p12 = scmp.lt.s32.totalorder %s540_s15, %s540_s15 }
  0x1c   :  { %p547_p13 = por %p546_p12, %p545_p11 }
  0x1e   :  { %p548_p0 = pnand %p547_p13, %p541_p10 }
  0x20   :  { %551 = shalt.err (!%p548_p0)
}
  0x21   :  { %52 = dma.hbm_to_vmem [thread:$0]  %s667_s3, 2048, %s47_s14, [#allocation7], %s580_s29, %s580_s29, %s581_s30  }
  0x22   :  { %572 = dma.done.wait [#allocation4], 256  }
  0x23   :  { %573 = vsyncadd [#allocation4], 4294967040 }
  0x24   :  { %574 = dma.done.wait [#allocation7], 4096  }
  0x25   :  { %575 = vsyncadd [#allocation7], 4294963200  ;;  %v91_v0 = vld [vmem:[#allocation6 + $0x78] sm:$0xff]  ;;  %v90_v1 = vld [vmem:[#allocation6 + $0x70] sm:$0xff]  ;;  %v295_v48 = vlaneseq  ;;  %s583_s21 = smov [#allocation9]  }
  0x26   :  { %408 = vmatprep.subr.mxu0 %v91_v0  ;;  %v89_v2 = vld [vmem:[#allocation6 + $0x68] sm:$0xff]  ;;  %v88_v3 = vld [vmem:[#allocation6 + $0x60] sm:$0xff]  ;;  %v642_v4 = vld [vmem:[#allocation3] sm:$0xff]  ;;  %s355_s22 = sshll.u32 %s583_s21, 4  ;;  %s356_s22 = int_to_ptr.vmem [resolvable:$true] %s355_s22 }
  0x27   :  { %409 = vmatpush3.msra.mxu0 %v91_v0  ;;  %v87_v5 = vld [vmem:[#allocation6 + $0x58] sm:$0xff]  ;;  %440 = vmatprep.mubr.f32.mxu0 %v642_v4  ;;  %v192_v7 = vld [vmem:[#allocation8 + $0x70] sm:$0xff]  ;;  %v191_v9 = vld [vmem:[#allocation8 + $0x68] sm:$0xff]  ;;  %v296_v49 = vand.u32 127, %v295_v48  ;;  %s552_s23 = scalar_lea.vmem %s356_s22, 256  ;;  %p557_p2 = scmp.lt.s32.totalorder %s356_s22, %s356_s22 }
  0x28   :  { %410 = vmatprep.subr.mxu0 %v90_v1  ;;  %v193_v6 = vld [vmem:[#allocation8 + $0x78] sm:$0xff]  ;;  %v86_v8 = vld [vmem:[#allocation6 + $0x50] sm:$0xff]  ;;  %v85_v10 = vld [vmem:[#allocation6 + $0x48] sm:$0xff]  ;;  %p553_p1 = scmp.ne.s32.totalorder %s356_s22, %s552_s23  ;;  %p558_p3 = scmp.lt.s32.totalorder %s552_s23, %s552_s23 }
  0x29   :  { %411 = vmatpush3.msra.mxu0 %v90_v1  ;;  %443 = vmatprep.subr.mxu1 %v193_v6  ;;  %v190_v11 = vld [vmem:[#allocation8 + $0x60] sm:$0xff]  ;;  %v189_v13 = vld [vmem:[#allocation8 + $0x58] sm:$0xff]  ;;  %v188_v15 = vld [vmem:[#allocation8 + $0x50] sm:$0xff]  ;;  %vm297_vm0 = vcmp.lt.s32.totalorder %v296_v49, 32 }
  0x2a   :  { %412 = vmatprep.subr.mxu0 %v89_v2  ;;  %444 = vmatpush3.msra.mxu1 %v193_v6  ;;  %v84_v12 = vld [vmem:[#allocation6 + $0x40] sm:$0xff]  ;;  %v83_v14 = vld [vmem:[#allocation6 + $0x38] sm:$0xff]  ;;  %v82_v16 = vld [vmem:[#allocation6 + $0x30] sm:$0xff]  ;;  %p559_p4 = por %p558_p3, %p557_p2 }
  0x2b   :  { %413 = vmatpush3.msra.mxu0 %v89_v2  ;;  %445 = vmatprep.subr.mxu1 %v192_v7  ;;  %v187_v17 = vld [vmem:[#allocation8 + $0x48] sm:$0xff]  ;;  %v186_v19 = vld [vmem:[#allocation8 + $0x40] sm:$0xff]  ;;  %v185_v21 = vld [vmem:[#allocation8 + $0x38] sm:$0xff] }
  0x2c   :  { %414 = vmatprep.subr.mxu0 %v88_v3  ;;  %446 = vmatpush3.msra.mxu1 %v192_v7  ;;  %v81_v18 = vld [vmem:[#allocation6 + $0x28] sm:$0xff]  ;;  %v80_v20 = vld [vmem:[#allocation6 + $0x20] sm:$0xff]  ;;  %v79_v22 = vld [vmem:[#allocation6 + $0x18] sm:$0xff]  ;;  %p560_p5 = pnand %p559_p4, %p553_p1 }
  0x2d   :  { %415 = vmatpush3.msra.mxu0 %v88_v3  ;;  %447 = vmatprep.subr.mxu1 %v191_v9  ;;  %v184_v23 = vld [vmem:[#allocation8 + $0x30] sm:$0xff]  ;;  %v183_v25 = vld [vmem:[#allocation8 + $0x28] sm:$0xff]  ;;  %v182_v27 = vld [vmem:[#allocation8 + $0x20] sm:$0xff] }
  0x2e   :  { %416 = vmatprep.subr.mxu0 %v87_v5  ;;  %448 = vmatpush3.msra.mxu1 %v191_v9  ;;  %v78_v24 = vld [vmem:[#allocation6 + $0x10] sm:$0xff]  ;;  %v77_v26 = vld [vmem:[#allocation6 + $0x8] sm:$0xff]  ;;  %v76_v28 = vld [vmem:[#allocation6] sm:$0xff] }
  0x2f   :  { %417 = vmatpush3.msra.mxu0 %v87_v5  ;;  %449 = vmatprep.subr.mxu1 %v190_v11  ;;  %v75_v29 = vld [vmem:[#allocation3 + $0x8] sm:$0xff]  ;;  %v180_v31 = vld [vmem:[#allocation8 + $0x10] sm:$0xff]  ;;  %v179_v32 = vld [vmem:[#allocation8 + $0x8] sm:$0xff] }
  0x30   :  { %418 = vmatprep.subr.mxu0 %v86_v8  ;;  %450 = vmatpush3.msra.mxu1 %v190_v11  ;;  %v181_v30 = vld [vmem:[#allocation8 + $0x18] sm:$0xff]  ;;  %v178_v33 = vld [vmem:[#allocation8] sm:$0xff]  ;;  %v368_v34 = vld [vmem:[%s666_s2] ss:$0 sm:$0xff] }
  0x31   :  { %419 = vmatpush3.msra.mxu0 %v86_v8  ;;  %451 = vmatprep.subr.mxu1 %v189_v13  ;;  %v369_v42 = vld [vmem:[%s668_s4] ss:$0 sm:$0xff] }
  0x32   :  { %420 = vmatprep.subr.mxu0 %v85_v10  ;;  %452 = vmatpush3.msra.mxu1 %v189_v13  ;;  %v370_v13 = vld [vmem:[%s669_s5] ss:$0 sm:$0xff] }
  0x33   :  { %421 = vmatpush3.msra.mxu0 %v85_v10  ;;  %453 = vmatprep.subr.mxu1 %v188_v15 }
  0x34   :  { %422 = vmatprep.subr.mxu0 %v84_v12  ;;  %454 = vmatpush3.msra.mxu1 %v188_v15  ;;  %v371_v15 = vld [vmem:[%s670_s6] ss:$0 sm:$0xff] }
  0x35   :  { %423 = vmatpush3.msra.mxu0 %v84_v12  ;;  %455 = vmatprep.subr.mxu1 %v187_v17 }
  0x36   :  { %424 = vmatprep.subr.mxu0 %v83_v14  ;;  %456 = vmatpush3.msra.mxu1 %v187_v17 }
  0x37   :  { %425 = vmatpush3.msra.mxu0 %v83_v14  ;;  %457 = vmatprep.subr.mxu1 %v186_v19 }
  0x38   :  { %426 = vmatprep.subr.mxu0 %v82_v16  ;;  %458 = vmatpush3.msra.mxu1 %v186_v19 }
  0x39   :  { %427 = vmatpush3.msra.mxu0 %v82_v16  ;;  %459 = vmatprep.subr.mxu1 %v185_v21 }
  0x3a   :  { %428 = vmatprep.subr.mxu0 %v81_v18  ;;  %460 = vmatpush3.msra.mxu1 %v185_v21 }
  0x3b   :  { %429 = vmatpush3.msra.mxu0 %v81_v18  ;;  %461 = vmatprep.subr.mxu1 %v184_v23 }
  0x3c   :  { %430 = vmatprep.subr.mxu0 %v80_v20  ;;  %462 = vmatpush3.msra.mxu1 %v184_v23 }
  0x3d   :  { %431 = vmatpush3.msra.mxu0 %v80_v20  ;;  %463 = vmatprep.subr.mxu1 %v183_v25 }
  0x3e   :  { %432 = vmatprep.subr.mxu0 %v79_v22  ;;  %464 = vmatpush3.msra.mxu1 %v183_v25 }
  0x3f   :  { %433 = vmatpush3.msra.mxu0 %v79_v22  ;;  %465 = vmatprep.subr.mxu1 %v182_v27 }
  0x40   :  { %434 = vmatprep.subr.mxu0 %v78_v24  ;;  %466 = vmatpush3.msra.mxu1 %v182_v27 }
  0x41   :  { %435 = vmatpush3.msra.mxu0 %v78_v24  ;;  %467 = vmatprep.subr.mxu1 %v181_v30 }
  0x42   :  { %436 = vmatprep.subr.mxu0 %v77_v26  ;;  %468 = vmatpush3.msra.mxu1 %v181_v30 }
  0x43   :  { %437 = vmatpush3.msra.mxu0 %v77_v26  ;;  %469 = vmatprep.subr.mxu1 %v180_v31 }
  0x44   :  { %438 = vmatprep.subr.mxu0 %v76_v28  ;;  %470 = vmatpush3.msra.mxu1 %v180_v31 }
  0x45   :  { %439 = vmatpush3.msra.mxu0 %v76_v28  ;;  %471 = vmatprep.subr.mxu1 %v179_v32 }
  0x46   :  { %441 = vmatmul.mubr.f32.vlgmr.msra.gmra.mxu0 %v75_v29  ;;  %472 = vmatpush3.msra.mxu1 %v179_v32 }
  0x47   :  { %473 = vmatprep.subr.mxu1 %v178_v33 }
  0x48   :  { %474 = vmatpush3.msra.mxu1 %v178_v33 }
 0x106   :  { %v442_v35 = vpop.f32.mrf.mxu0 }
 0x107   :  { %v171_v36 = vadd.f32 %v442_v35, %v368_v34 }
 0x108   :  { %v165_v37 = vpop.f32.mrf.mxu0 }
 0x109   :  { %v166_v38 = vadd.f32 %v368_v34, %v165_v37  ;;  %v175_v40 = vmax.f32 %v171_v36, 0.0 }
 0x10b   :  { %v174_v39 = vmax.f32 %v166_v38, 0.0 }
 0x10d   :  { %475 = vmatprep.mubr.f32.mxu1 %v174_v39 }
 0x10e   :  { %476 = vmatmul.mubr.f32.vlgmr.msra.gmra.mxu1 %v175_v40 }
 0x1ce   :  { %v477_v41 = vpop.f32.mrf.mxu1 }
 0x1cf   :  { %v286_v45 = vadd.f32 %v477_v41, %v369_v42 }
 0x1d0   :  { %v260_v43 = vpop.f32.mrf.mxu1 }
 0x1d1   :  { %v285_v44 = vadd.f32 %v369_v42, %v260_v43  ;;  %v288_v47 = vadd.f32 %v286_v45, %v75_v29 }
 0x1d3   :  { %v287_v46 = vadd.f32 %v285_v44, %v642_v4 }
 0x1d5   :  { %289 = vadd.xlane.f32.xlu0 %v287_v46 }
 0x1d9   :  { %291 = vadd.xlane.f32.xlu0 %v288_v47 }
 0x25e   :  { %v290_v50 = vpop.xlane.xlu0 %289 }
 0x25f   :  { %v293_v51 = vmul.f32 0.03125, %v290_v50 }
 0x261   :  { %v298_v52 = vsub.f32 %v287_v46, %v293_v51 }
 0x262   :  { %v292_v53 = vpop.xlane.xlu0 %291 }
 0x263   :  { %v294_v54 = vmul.f32 0.03125, %v292_v53  ;;  %v300_v55 = vsel %vm297_vm0, %v298_v52, 0.0 }
 0x264   :  { %v302_v56 = vmul.f32 %v300_v55, %v300_v55 }
 0x265   :  { %v299_v57 = vsub.f32 %v288_v47, %v294_v54 }
 0x266   :  { %304 = vadd.xlane.f32.xlu1 %v302_v56 }
 0x267   :  { %v301_v58 = vsel %vm297_vm0, %v299_v57, 0.0 }
 0x268   :  { %v303_v59 = vmul.f32 %v301_v58, %v301_v58 }
 0x26a   :  { %306 = vadd.xlane.f32.xlu1 %v303_v59 }
 0x2ef   :  { %v305_v60 = vpop.xlane.xlu1 %304 }
 0x2f0   :  { %v308_v61 = vmul.f32 0.032258064, %v305_v60 }
 0x2f2   :  { %484 = vrsqrt.f32 %v308_v61  ;;  %vm312_vm1 = vcmp.eq.f32.partialorder %v308_v61, inf  ;;  %v315_v2 = vand.u32 2147483648, %v308_v61  ;;  %vm314_vm2 = vcmp.eq.f32.partialorder %v308_v61, 0.0 }
 0x2f3   :  { %v307_v62 = vpop.xlane.xlu1 %306 }
 0x2f4   :  { %v309_v63 = vmul.f32 0.032258064, %v307_v62 }
 0x2f6   :  { %486 = vrsqrt.f32 %v309_v63  ;;  %vm319_vm3 = vcmp.eq.f32.partialorder %v309_v63, inf  ;;  %v322_v8 = vand.u32 2147483648, %v309_v63  ;;  %vm321_vm4 = vcmp.eq.f32.partialorder %v309_v63, 0.0 }
 0x2ff   :  { %v485_v0 = vpop.eup %484 }
 0x300   :  { %v311_v1 = vmul.f32 %v485_v0, %v308_v61 }
 0x302   :  { %v313_v3 = vsel %vm312_vm1, %v308_v61, %v311_v1 }
 0x303   :  { %v487_v4 = vpop.eup %486  ;;  %v316_v5 = vsel %vm314_vm2, %v315_v2, %v313_v3 }
 0x304   :  { %v324_v6 = vadd.f32 0.001, %v316_v5  ;;  %v318_v7 = vmul.f32 %v487_v4, %v309_v63 }
 0x306   :  { %488 = vrcp.f32 %v324_v6  ;;  %v320_v9 = vsel %vm319_vm3, %v309_v63, %v318_v7 }
 0x307   :  { %v323_v10 = vsel %vm321_vm4, %v322_v8, %v320_v9 }
 0x308   :  { %v325_v11 = vadd.f32 0.001, %v323_v10 }
 0x30a   :  { %490 = vrcp.f32 %v325_v11 }
 0x313   :  { %v489_v12 = vpop.eup %488 }
 0x314   :  { %v327_v14 = vmul.f32 %v489_v12, %v300_v55 }
 0x316   :  { %v337_v16 = vmul.f32 %v370_v13, %v327_v14 }
 0x317   :  { %v491_v17 = vpop.eup %490 }
 0x318   :  { %v329_v18 = vmul.f32 %v491_v17, %v301_v58  ;;  %v346_v19 = vadd.f32 %v371_v15, %v337_v16 }
 0x31a   :  { %v338_v20 = vmul.f32 %v370_v13, %v329_v18  ;;  %348 = vst [vmem:[#allocation9] sm:$0xff] %v346_v19 }
 0x31c   :  { %v347_v21 = vadd.f32 %v371_v15, %v338_v20 }
 0x31e   :  { %349 = vst [vmem:[#allocation9 + $0x8] sm:$0xff] %v347_v21 }
 0x31f   :  { %563 = shalt.err (!%p560_p5)
}
 0x320   :  { %361 = dma.vmem_to_hbm [thread:$0]  %s356_s22, 256, %s671_s7, [#allocation5], %s580_s29, %s580_s29, %s581_s30  }
 0x321   :  { %576 = dma.done.wait [#allocation5], 256  }
 0x322   :  { %577 = vsyncadd [#allocation5], 4294967040 }
 0x323   :  { %365 = vsyncpa [#allocation4], 1 }
 0x324   :  { %366 = vsyncpa [#allocation7], 1 }
 0x325   :  { %367 = vsyncpa [#allocation5], 1 }

</bundles_post_ra>
